<compile_context>
chip_gen: v7x
topology: tpu7x:2x2x1
jax: 0.10.0
libtpu: 0.0.40
codegen_flags: <defaults>
</compile_context>

<pallas_src>
import functools

import jax
import jax.numpy as jnp
from jax.experimental import pallas as pl
from jax.experimental.pallas import tpu as pltpu


# ---------------------------------------------------------------------------
# Fused Pallas kernel: whole PostNet for one (batch, time-tile) block
# ---------------------------------------------------------------------------
def _postnet_fused_kernel(x_ref, *rest, num_layers, K, pad, T, T_tile, halo):
    # x_ref : (1, T_pad_total, C_in0)  NWC, zero-padded input (bf16), whole row
    # rest  : w_0..w_{L-1} (K, C_in, C_out) bf16,
    #         s_0..s_{L-1} (1, C_out) f32 folded conv-bias + BN shift,
    #         o_ref (1, T_tile, C_out_last) f32
    w_refs = rest[:num_layers]
    s_refs = rest[num_layers:2 * num_layers]
    o_ref = rest[2 * num_layers]

    cdt = x_ref.dtype                       # matmul operand dtype (bf16)
    t = pl.program_id(1)
    start = t * T_tile
    if T_tile % 128 == 0:
        start = pl.multiple_of(start, 128)
    elif T_tile % 8 == 0:
        start = pl.multiple_of(start, 8)

    L = T_tile + 2 * halo                   # rows of the layer-0 input window
    a = x_ref[0, pl.ds(start, L), :]        # (L, C_in0) NWC
    t0 = t * T_tile - halo                  # global time index of row 0 of `a`

    for l in range(num_layers):
        L_out = L - 2 * pad
        c_out = w_refs[l].shape[2]

        # K-tap 'same' conv as K (L_out, C_in) x (C_in, C_out) MXU matmuls,
        # accumulated in f32.
        acc = jnp.zeros((L_out, c_out), jnp.float32)
        for k in range(K):
            acc = acc + jnp.dot(a[k:k + L_out, :], w_refs[l][k],
                                preferred_element_type=jnp.float32)

        y = acc + s_refs[l][...]            # folded bias + BN shift, lane-major
        t0 = t0 + pad
        L = L_out

        if l < num_layers - 1:
            y = jnp.tanh(y)                 # dropout(0.5) is eval-mode identity
            # Rows whose global time is outside [0, T) are the next layer's
            # zero padding at the sequence boundary: force them back to zero.
            g = jax.lax.broadcasted_iota(jnp.int32, (L, 1), 0) + t0
            y = jnp.where((g >= 0) & (g < T), y, 0.0)
            a = y.astype(cdt)
        else:
            o_ref[0] = y.astype(o_ref.dtype)    # (T_tile, mel) NWC output tile


# ---------------------------------------------------------------------------
# Wrapper: fold BN, build operands, tile time, call the fused kernel
# ---------------------------------------------------------------------------
def postnet_forward(x, params, *, t_tile_target=512, compute_dtype=jnp.bfloat16):
    """x: (N, mel_bins, T) float32 in PyTorch NCW layout. Returns same layout."""
    N, C0, T = x.shape
    num_layers = len(params)
    K = params[0]["w"].shape[-1]
    pad = (K - 1) // 2
    halo = num_layers * pad

    if T <= t_tile_target:
        n_t, T_tile = 1, T
    else:
        T_tile = t_tile_target
        n_t = pl.cdiv(T, T_tile)
    T_ceil = n_t * T_tile
    T_pad_total = T_ceil + 2 * halo

    # One-time layout prep on the (small) network input: NCW -> NWC, pad the
    # time axis with the fused halo + tile round-up, cast the matmul operand.
    x_nwc = jnp.transpose(x, (0, 2, 1))
    x_nwc = jnp.pad(x_nwc, ((0, 0), (halo, T_ceil - T + halo), (0, 0)))
    x_nwc = x_nwc.astype(compute_dtype)

    # Fold eval-mode BN into the conv weights / shift; tap-major matmul layout.
    w_mats, shifts = [], []
    for p in params:
        s = p["gamma"] * jax.lax.rsqrt(p["var"] + 1e-5)            # (C_out,)
        w_folded = p["w"] * s[:, None, None]                        # (C_out, C_in, K)
        shift = (p["b"] - p["mean"]) * s + p["beta"]                # (C_out,)
        w_mats.append(jnp.transpose(w_folded, (2, 1, 0)).astype(compute_dtype))
        shifts.append(shift.reshape(1, -1).astype(jnp.float32))
    C_last = w_mats[-1].shape[-1]

    kernel = functools.partial(
        _postnet_fused_kernel, num_layers=num_layers, K=K, pad=pad,
        T=T, T_tile=T_tile, halo=halo)

    in_specs = [pl.BlockSpec((1, T_pad_total, C0), lambda n, t: (n, 0, 0))]
    in_specs += [pl.BlockSpec(w.shape, lambda n, t: (0, 0, 0)) for w in w_mats]
    in_specs += [pl.BlockSpec(sh.shape, lambda n, t: (0, 0)) for sh in shifts]
    out_spec = pl.BlockSpec((1, T_tile, C_last), lambda n, t: (n, t, 0))

    # VMEM budgeting: only set an explicit limit if the footprint outgrows the
    # default scoped budget (keeps small configs on the safe default path).
    itemsize = jnp.dtype(compute_dtype).itemsize
    c_max = max(w.shape[1] for w in w_mats)
    vmem_est = 2 * T_pad_total * C0 * itemsize
    vmem_est += sum(2 * w.size * itemsize for w in w_mats)
    vmem_est += sum(2 * sh.size * 4 for sh in shifts)
    vmem_est += 2 * T_tile * C_last * 4
    vmem_est += 8 * (T_tile + 2 * halo) * c_max * 4       # in-flight activations
    cp_kwargs = dict(dimension_semantics=("parallel", "parallel"))
    if vmem_est > 12 * 1024 * 1024:
        cp_kwargs["vmem_limit_bytes"] = min(int(1.5 * vmem_est), 100 * 1024 * 1024)

    out_nwc = pl.pallas_call(
        kernel,
        out_shape=jax.ShapeDtypeStruct((N, T_ceil, C_last), x.dtype),
        grid_spec=pltpu.PrefetchScalarGridSpec(
            num_scalar_prefetch=0,
            grid=(N, n_t),
            in_specs=in_specs,
            out_specs=out_spec),
        compiler_params=pltpu.CompilerParams(**cp_kwargs),
    )(x_nwc, *w_mats, *shifts)

    # Back to PyTorch NCW layout; drop the tile round-up tail.
    return jnp.transpose(out_nwc[:, :T, :], (0, 2, 1))


# ---------------------------------------------------------------------------
# Parameter construction (deterministic, synthetic)
# ---------------------------------------------------------------------------
def make_params(key, mel_bins, channels, ksize, num_layers):
    dims = [(mel_bins, channels)]
    dims += [(channels, channels)] * (num_layers - 2)
    dims += [(channels, mel_bins)]
    params = []
    for (c_in, c_out) in dims:
        key, k1, k2, k3, k4, k5, k6 = jax.random.split(key, 7)
        params.append(dict(
            w=jax.random.normal(k1, (c_out, c_in, ksize), jnp.float32) * 0.1,
            b=jax.random.normal(k2, (c_out,), jnp.float32) * 0.1,
            gamma=1.0 + 0.1 * jax.random.normal(k3, (c_out,), jnp.float32),
            beta=0.1 * jax.random.normal(k4, (c_out,), jnp.float32),
            mean=0.1 * jax.random.normal(k5, (c_out,), jnp.float32),
            var=1.0 + 0.5 * jax.random.uniform(k6, (c_out,), jnp.float32),
        ))
    return params


# ---------------------------------------------------------------------------
# Pure-JAX reference (f32) for a correctness sanity check
# ---------------------------------------------------------------------------
def postnet_reference(x, params):
    n_layers = len(params)
    for i, p in enumerate(params):
        K = p["w"].shape[-1]
        pad = (K - 1) // 2
        y = jax.lax.conv_general_dilated(
            x, p["w"], window_strides=(1,), padding=[(pad, pad)],
            dimension_numbers=("NCH", "OIH", "NCH"))
        y = y + p["b"][None, :, None]
        y = (y - p["mean"][None, :, None]) / jnp.sqrt(p["var"][None, :, None] + 1e-5)
        y = y * p["gamma"][None, :, None] + p["beta"][None, :, None]
        if i < n_layers - 1:
            y = jnp.tanh(y)
        x = y
    return x


if __name__ == "__main__":
    mel_bins = 8
    channels = 16
    ksize = 5
    num_layers = 3
    N, T = 2, 32

    key = jax.random.PRNGKey(0)
    kx, kp = jax.random.split(key)
    x = jax.random.normal(kx, (N, mel_bins, T), jnp.float32)
    params = make_params(kp, mel_bins, channels, ksize, num_layers)

    ref = postnet_reference(x, params)

    # Single-tile path (T <= tile target).
    out = jax.block_until_ready(postnet_forward(x, params))
    assert out.shape == (N, mel_bins, T)
    assert jnp.allclose(out, ref, atol=5e-2, rtol=5e-2), "mismatch vs reference"

    # Time-tiled path (exercises the halo + boundary re-zeroing logic).
    out_tiled = jax.block_until_ready(postnet_forward(x, params, t_tile_target=16))
    assert jnp.allclose(out_tiled, ref, atol=5e-2, rtol=5e-2), "tiled mismatch"

    print("KERNEL_OK")
</pallas_src>

<mosaic_0001>
module attributes {stable_mosaic.version = 11 : i64} {
  func.func @_postnet_fused_kernel(%arg0: i32, %arg1: i32, %arg2: memref<1x44x8xbf16, #tpu.memory_space<vmem>>, %arg3: memref<5x8x16xbf16, #tpu.memory_space<vmem>>, %arg4: memref<5x16x16xbf16, #tpu.memory_space<vmem>>, %arg5: memref<5x16x8xbf16, #tpu.memory_space<vmem>>, %arg6: memref<1x16xf32, #tpu.memory_space<vmem>>, %arg7: memref<1x16xf32, #tpu.memory_space<vmem>>, %arg8: memref<1x8xf32, #tpu.memory_space<vmem>>, %arg9: memref<1x32x8xf32, #tpu.memory_space<vmem>>) attributes {dimension_semantics = [#tpu.dimension_semantics<parallel>, #tpu.dimension_semantics<parallel>], iteration_bounds = array<i64: 2, 1>, scalar_prefetch = 0 : i64, scratch_operands = 0 : i64, tpu.core_type = #tpu.core_type<tc>, window_params = [{transform_indices = @transform_0, window_bounds = array<i64: 1, 44, 8>}, {pipeline_mode = #tpu.pipeline_mode<synchronous>, transform_indices = @transform_1, window_bounds = array<i64: 5, 8, 16>}, {pipeline_mode = #tpu.pipeline_mode<synchronous>, transform_indices = @transform_2, window_bounds = array<i64: 5, 16, 16>}, {pipeline_mode = #tpu.pipeline_mode<synchronous>, transform_indices = @transform_3, window_bounds = array<i64: 5, 16, 8>}, {pipeline_mode = #tpu.pipeline_mode<synchronous>, transform_indices = @transform_4, window_bounds = array<i64: 1, 16>}, {pipeline_mode = #tpu.pipeline_mode<synchronous>, transform_indices = @transform_5, window_bounds = array<i64: 1, 16>}, {pipeline_mode = #tpu.pipeline_mode<synchronous>, transform_indices = @transform_6, window_bounds = array<i64: 1, 8>}, {transform_indices = @transform_7, window_bounds = array<i64: 1, 32, 8>}]} {
    %c32_i32 = arith.constant 32 : i32
    %0 = arith.muli %arg1, %c32_i32 : i32
    %1 = tpu.assume_multiple %0, 8 : i32
    %c0 = arith.constant 0 : index
    %2 = arith.index_cast %1 : i32 to index
    %c0_0 = arith.constant 0 : index
    %3 = vector.load %arg2[%c0, %2, %c0_0] : memref<1x44x8xbf16, #tpu.memory_space<vmem>>, vector<1x44x8xbf16>
    %4 = vector.shape_cast %3 : vector<1x44x8xbf16> to vector<44x8xbf16>
    %c32_i32_1 = arith.constant 32 : i32
    %5 = arith.muli %arg1, %c32_i32_1 : i32
    %c6_i32 = arith.constant 6 : i32
    %6 = arith.subi %5, %c6_i32 : i32
    %cst = arith.constant 0.000000e+00 : f32
    %7 = vector.broadcast %cst : f32 to vector<40x16xf32>
    %8 = vector.extract_strided_slice %4 {offsets = [0, 0], sizes = [40, 8], strides = [1, 1]} : vector<44x8xbf16> to vector<40x8xbf16>
    %c0_2 = arith.constant 0 : index
    %c0_3 = arith.constant 0 : index
    %c0_4 = arith.constant 0 : index
    %9 = vector.load %arg3[%c0_2, %c0_3, %c0_4] : memref<5x8x16xbf16, #tpu.memory_space<vmem>>, vector<1x8x16xbf16>
    %10 = vector.shape_cast %9 : vector<1x8x16xbf16> to vector<8x16xbf16>
    %cst_5 = arith.constant dense<0.000000e+00> : vector<40x16xf32>
    %11 = tpu.matmul %8, %10, %cst_5 {dimension_numbers = #tpu.dot_dimension_numbers<[1], [0], [0], [1], [0, 0, 1, 1], [], []>} : vector<40x8xbf16>, vector<8x16xbf16>, vector<40x16xf32> -> vector<40x16xf32>
    %12 = arith.addf %7, %11 : vector<40x16xf32>
    %13 = vector.extract_strided_slice %4 {offsets = [1, 0], sizes = [40, 8], strides = [1, 1]} : vector<44x8xbf16> to vector<40x8xbf16>
    %c1 = arith.constant 1 : index
    %c0_6 = arith.constant 0 : index
    %c0_7 = arith.constant 0 : index
    %14 = vector.load %arg3[%c1, %c0_6, %c0_7] : memref<5x8x16xbf16, #tpu.memory_space<vmem>>, vector<1x8x16xbf16>
    %15 = vector.shape_cast %14 : vector<1x8x16xbf16> to vector<8x16xbf16>
    %cst_8 = arith.constant dense<0.000000e+00> : vector<40x16xf32>
    %16 = tpu.matmul %13, %15, %cst_8 {dimension_numbers = #tpu.dot_dimension_numbers<[1], [0], [0], [1], [0, 0, 1, 1], [], []>} : vector<40x8xbf16>, vector<8x16xbf16>, vector<40x16xf32> -> vector<40x16xf32>
    %17 = arith.addf %12, %16 : vector<40x16xf32>
    %18 = vector.extract_strided_slice %4 {offsets = [2, 0], sizes = [40, 8], strides = [1, 1]} : vector<44x8xbf16> to vector<40x8xbf16>
    %c2 = arith.constant 2 : index
    %c0_9 = arith.constant 0 : index
    %c0_10 = arith.constant 0 : index
    %19 = vector.load %arg3[%c2, %c0_9, %c0_10] : memref<5x8x16xbf16, #tpu.memory_space<vmem>>, vector<1x8x16xbf16>
    %20 = vector.shape_cast %19 : vector<1x8x16xbf16> to vector<8x16xbf16>
    %cst_11 = arith.constant dense<0.000000e+00> : vector<40x16xf32>
    %21 = tpu.matmul %18, %20, %cst_11 {dimension_numbers = #tpu.dot_dimension_numbers<[1], [0], [0], [1], [0, 0, 1, 1], [], []>} : vector<40x8xbf16>, vector<8x16xbf16>, vector<40x16xf32> -> vector<40x16xf32>
    %22 = arith.addf %17, %21 : vector<40x16xf32>
    %23 = vector.extract_strided_slice %4 {offsets = [3, 0], sizes = [40, 8], strides = [1, 1]} : vector<44x8xbf16> to vector<40x8xbf16>
    %c3 = arith.constant 3 : index
    %c0_12 = arith.constant 0 : index
    %c0_13 = arith.constant 0 : index
    %24 = vector.load %arg3[%c3, %c0_12, %c0_13] : memref<5x8x16xbf16, #tpu.memory_space<vmem>>, vector<1x8x16xbf16>
    %25 = vector.shape_cast %24 : vector<1x8x16xbf16> to vector<8x16xbf16>
    %cst_14 = arith.constant dense<0.000000e+00> : vector<40x16xf32>
    %26 = tpu.matmul %23, %25, %cst_14 {dimension_numbers = #tpu.dot_dimension_numbers<[1], [0], [0], [1], [0, 0, 1, 1], [], []>} : vector<40x8xbf16>, vector<8x16xbf16>, vector<40x16xf32> -> vector<40x16xf32>
    %27 = arith.addf %22, %26 : vector<40x16xf32>
    %28 = vector.extract_strided_slice %4 {offsets = [4, 0], sizes = [40, 8], strides = [1, 1]} : vector<44x8xbf16> to vector<40x8xbf16>
    %c4 = arith.constant 4 : index
    %c0_15 = arith.constant 0 : index
    %c0_16 = arith.constant 0 : index
    %29 = vector.load %arg3[%c4, %c0_15, %c0_16] : memref<5x8x16xbf16, #tpu.memory_space<vmem>>, vector<1x8x16xbf16>
    %30 = vector.shape_cast %29 : vector<1x8x16xbf16> to vector<8x16xbf16>
    %cst_17 = arith.constant dense<0.000000e+00> : vector<40x16xf32>
    %31 = tpu.matmul %28, %30, %cst_17 {dimension_numbers = #tpu.dot_dimension_numbers<[1], [0], [0], [1], [0, 0, 1, 1], [], []>} : vector<40x8xbf16>, vector<8x16xbf16>, vector<40x16xf32> -> vector<40x16xf32>
    %32 = arith.addf %27, %31 : vector<40x16xf32>
    %c0_18 = arith.constant 0 : index
    %c0_19 = arith.constant 0 : index
    %33 = vector.load %arg6[%c0_18, %c0_19] : memref<1x16xf32, #tpu.memory_space<vmem>>, vector<1x16xf32>
    %34 = vector.broadcast %33 : vector<1x16xf32> to vector<40x16xf32>
    %35 = arith.addf %32, %34 : vector<40x16xf32>
    %c2_i32 = arith.constant 2 : i32
    %36 = arith.addi %6, %c2_i32 : i32
    %37 = math.tanh %35 : vector<40x16xf32>
    %38 = tpu.iota {dimensions = array<i32: 0>} : vector<40x1xi32>
    %39 = vector.broadcast %36 : i32 to vector<40x1xi32>
    %40 = arith.addi %38, %39 : vector<40x1xi32>
    %c0_i32 = arith.constant 0 : i32
    %41 = vector.broadcast %c0_i32 : i32 to vector<40x1xi32>
    %42 = arith.cmpi sge, %40, %41 : vector<40x1xi32>
    %c32_i32_20 = arith.constant 32 : i32
    %43 = vector.broadcast %c32_i32_20 : i32 to vector<40x1xi32>
    %44 = arith.cmpi slt, %40, %43 : vector<40x1xi32>
    %45 = arith.andi %42, %44 : vector<40x1xi1>
    %cst_21 = arith.constant 0.000000e+00 : f32
    %46 = vector.shape_cast %45 : vector<40x1xi1> to vector<40x1xi1>
    %47 = vector.broadcast %46 : vector<40x1xi1> to vector<40x16xi1>
    %48 = vector.broadcast %cst_21 : f32 to vector<40x16xf32>
    %49 = arith.select %47, %37, %48 : vector<40x16xi1>, vector<40x16xf32>
    %50 = arith.truncf %49 : vector<40x16xf32> to vector<40x16xbf16>
    %cst_22 = arith.constant 0.000000e+00 : f32
    %51 = vector.broadcast %cst_22 : f32 to vector<36x16xf32>
    %52 = vector.extract_strided_slice %50 {offsets = [0, 0], sizes = [36, 16], strides = [1, 1]} : vector<40x16xbf16> to vector<36x16xbf16>
    %c0_23 = arith.constant 0 : index
    %c0_24 = arith.constant 0 : index
    %c0_25 = arith.constant 0 : index
    %53 = vector.load %arg4[%c0_23, %c0_24, %c0_25] : memref<5x16x16xbf16, #tpu.memory_space<vmem>>, vector<1x16x16xbf16>
    %54 = vector.shape_cast %53 : vector<1x16x16xbf16> to vector<16x16xbf16>
    %cst_26 = arith.constant dense<0.000000e+00> : vector<36x16xf32>
    %55 = tpu.matmul %52, %54, %cst_26 {dimension_numbers = #tpu.dot_dimension_numbers<[1], [0], [0], [1], [0, 0, 1, 1], [], []>} : vector<36x16xbf16>, vector<16x16xbf16>, vector<36x16xf32> -> vector<36x16xf32>
    %56 = arith.addf %51, %55 : vector<36x16xf32>
    %57 = vector.extract_strided_slice %50 {offsets = [1, 0], sizes = [36, 16], strides = [1, 1]} : vector<40x16xbf16> to vector<36x16xbf16>
    %c1_27 = arith.constant 1 : index
    %c0_28 = arith.constant 0 : index
    %c0_29 = arith.constant 0 : index
    %58 = vector.load %arg4[%c1_27, %c0_28, %c0_29] : memref<5x16x16xbf16, #tpu.memory_space<vmem>>, vector<1x16x16xbf16>
    %59 = vector.shape_cast %58 : vector<1x16x16xbf16> to vector<16x16xbf16>
    %cst_30 = arith.constant dense<0.000000e+00> : vector<36x16xf32>
    %60 = tpu.matmul %57, %59, %cst_30 {dimension_numbers = #tpu.dot_dimension_numbers<[1], [0], [0], [1], [0, 0, 1, 1], [], []>} : vector<36x16xbf16>, vector<16x16xbf16>, vector<36x16xf32> -> vector<36x16xf32>
    %61 = arith.addf %56, %60 : vector<36x16xf32>
    %62 = vector.extract_strided_slice %50 {offsets = [2, 0], sizes = [36, 16], strides = [1, 1]} : vector<40x16xbf16> to vector<36x16xbf16>
    %c2_31 = arith.constant 2 : index
    %c0_32 = arith.constant 0 : index
    %c0_33 = arith.constant 0 : index
    %63 = vector.load %arg4[%c2_31, %c0_32, %c0_33] : memref<5x16x16xbf16, #tpu.memory_space<vmem>>, vector<1x16x16xbf16>
    %64 = vector.shape_cast %63 : vector<1x16x16xbf16> to vector<16x16xbf16>
    %cst_34 = arith.constant dense<0.000000e+00> : vector<36x16xf32>
    %65 = tpu.matmul %62, %64, %cst_34 {dimension_numbers = #tpu.dot_dimension_numbers<[1], [0], [0], [1], [0, 0, 1, 1], [], []>} : vector<36x16xbf16>, vector<16x16xbf16>, vector<36x16xf32> -> vector<36x16xf32>
    %66 = arith.addf %61, %65 : vector<36x16xf32>
    %67 = vector.extract_strided_slice %50 {offsets = [3, 0], sizes = [36, 16], strides = [1, 1]} : vector<40x16xbf16> to vector<36x16xbf16>
    %c3_35 = arith.constant 3 : index
    %c0_36 = arith.constant 0 : index
    %c0_37 = arith.constant 0 : index
    %68 = vector.load %arg4[%c3_35, %c0_36, %c0_37] : memref<5x16x16xbf16, #tpu.memory_space<vmem>>, vector<1x16x16xbf16>
    %69 = vector.shape_cast %68 : vector<1x16x16xbf16> to vector<16x16xbf16>
    %cst_38 = arith.constant dense<0.000000e+00> : vector<36x16xf32>
    %70 = tpu.matmul %67, %69, %cst_38 {dimension_numbers = #tpu.dot_dimension_numbers<[1], [0], [0], [1], [0, 0, 1, 1], [], []>} : vector<36x16xbf16>, vector<16x16xbf16>, vector<36x16xf32> -> vector<36x16xf32>
    %71 = arith.addf %66, %70 : vector<36x16xf32>
    %72 = vector.extract_strided_slice %50 {offsets = [4, 0], sizes = [36, 16], strides = [1, 1]} : vector<40x16xbf16> to vector<36x16xbf16>
    %c4_39 = arith.constant 4 : index
    %c0_40 = arith.constant 0 : index
    %c0_41 = arith.constant 0 : index
    %73 = vector.load %arg4[%c4_39, %c0_40, %c0_41] : memref<5x16x16xbf16, #tpu.memory_space<vmem>>, vector<1x16x16xbf16>
    %74 = vector.shape_cast %73 : vector<1x16x16xbf16> to vector<16x16xbf16>
    %cst_42 = arith.constant dense<0.000000e+00> : vector<36x16xf32>
    %75 = tpu.matmul %72, %74, %cst_42 {dimension_numbers = #tpu.dot_dimension_numbers<[1], [0], [0], [1], [0, 0, 1, 1], [], []>} : vector<36x16xbf16>, vector<16x16xbf16>, vector<36x16xf32> -> vector<36x16xf32>
    %76 = arith.addf %71, %75 : vector<36x16xf32>
    %c0_43 = arith.constant 0 : index
    %c0_44 = arith.constant 0 : index
    %77 = vector.load %arg7[%c0_43, %c0_44] : memref<1x16xf32, #tpu.memory_space<vmem>>, vector<1x16xf32>
    %78 = vector.broadcast %77 : vector<1x16xf32> to vector<36x16xf32>
    %79 = arith.addf %76, %78 : vector<36x16xf32>
    %c2_i32_45 = arith.constant 2 : i32
    %80 = arith.addi %36, %c2_i32_45 : i32
    %81 = math.tanh %79 : vector<36x16xf32>
    %82 = tpu.iota {dimensions = array<i32: 0>} : vector<36x1xi32>
    %83 = vector.broadcast %80 : i32 to vector<36x1xi32>
    %84 = arith.addi %82, %83 : vector<36x1xi32>
    %c0_i32_46 = arith.constant 0 : i32
    %85 = vector.broadcast %c0_i32_46 : i32 to vector<36x1xi32>
    %86 = arith.cmpi sge, %84, %85 : vector<36x1xi32>
    %c32_i32_47 = arith.constant 32 : i32
    %87 = vector.broadcast %c32_i32_47 : i32 to vector<36x1xi32>
    %88 = arith.cmpi slt, %84, %87 : vector<36x1xi32>
    %89 = arith.andi %86, %88 : vector<36x1xi1>
    %cst_48 = arith.constant 0.000000e+00 : f32
    %90 = vector.shape_cast %89 : vector<36x1xi1> to vector<36x1xi1>
    %91 = vector.broadcast %90 : vector<36x1xi1> to vector<36x16xi1>
    %92 = vector.broadcast %cst_48 : f32 to vector<36x16xf32>
    %93 = arith.select %91, %81, %92 : vector<36x16xi1>, vector<36x16xf32>
    %94 = arith.truncf %93 : vector<36x16xf32> to vector<36x16xbf16>
    %cst_49 = arith.constant 0.000000e+00 : f32
    %95 = vector.broadcast %cst_49 : f32 to vector<32x8xf32>
    %96 = vector.extract_strided_slice %94 {offsets = [0, 0], sizes = [32, 16], strides = [1, 1]} : vector<36x16xbf16> to vector<32x16xbf16>
    %c0_50 = arith.constant 0 : index
    %c0_51 = arith.constant 0 : index
    %c0_52 = arith.constant 0 : index
    %97 = vector.load %arg5[%c0_50, %c0_51, %c0_52] : memref<5x16x8xbf16, #tpu.memory_space<vmem>>, vector<1x16x8xbf16>
    %98 = vector.shape_cast %97 : vector<1x16x8xbf16> to vector<16x8xbf16>
    %cst_53 = arith.constant dense<0.000000e+00> : vector<32x8xf32>
    %99 = tpu.matmul %96, %98, %cst_53 {dimension_numbers = #tpu.dot_dimension_numbers<[1], [0], [0], [1], [0, 0, 1, 1], [], []>} : vector<32x16xbf16>, vector<16x8xbf16>, vector<32x8xf32> -> vector<32x8xf32>
    %100 = arith.addf %95, %99 : vector<32x8xf32>
    %101 = vector.extract_strided_slice %94 {offsets = [1, 0], sizes = [32, 16], strides = [1, 1]} : vector<36x16xbf16> to vector<32x16xbf16>
    %c1_54 = arith.constant 1 : index
    %c0_55 = arith.constant 0 : index
    %c0_56 = arith.constant 0 : index
    %102 = vector.load %arg5[%c1_54, %c0_55, %c0_56] : memref<5x16x8xbf16, #tpu.memory_space<vmem>>, vector<1x16x8xbf16>
    %103 = vector.shape_cast %102 : vector<1x16x8xbf16> to vector<16x8xbf16>
    %cst_57 = arith.constant dense<0.000000e+00> : vector<32x8xf32>
    %104 = tpu.matmul %101, %103, %cst_57 {dimension_numbers = #tpu.dot_dimension_numbers<[1], [0], [0], [1], [0, 0, 1, 1], [], []>} : vector<32x16xbf16>, vector<16x8xbf16>, vector<32x8xf32> -> vector<32x8xf32>
    %105 = arith.addf %100, %104 : vector<32x8xf32>
    %106 = vector.extract_strided_slice %94 {offsets = [2, 0], sizes = [32, 16], strides = [1, 1]} : vector<36x16xbf16> to vector<32x16xbf16>
    %c2_58 = arith.constant 2 : index
    %c0_59 = arith.constant 0 : index
    %c0_60 = arith.constant 0 : index
    %107 = vector.load %arg5[%c2_58, %c0_59, %c0_60] : memref<5x16x8xbf16, #tpu.memory_space<vmem>>, vector<1x16x8xbf16>
    %108 = vector.shape_cast %107 : vector<1x16x8xbf16> to vector<16x8xbf16>
    %cst_61 = arith.constant dense<0.000000e+00> : vector<32x8xf32>
    %109 = tpu.matmul %106, %108, %cst_61 {dimension_numbers = #tpu.dot_dimension_numbers<[1], [0], [0], [1], [0, 0, 1, 1], [], []>} : vector<32x16xbf16>, vector<16x8xbf16>, vector<32x8xf32> -> vector<32x8xf32>
    %110 = arith.addf %105, %109 : vector<32x8xf32>
    %111 = vector.extract_strided_slice %94 {offsets = [3, 0], sizes = [32, 16], strides = [1, 1]} : vector<36x16xbf16> to vector<32x16xbf16>
    %c3_62 = arith.constant 3 : index
    %c0_63 = arith.constant 0 : index
    %c0_64 = arith.constant 0 : index
    %112 = vector.load %arg5[%c3_62, %c0_63, %c0_64] : memref<5x16x8xbf16, #tpu.memory_space<vmem>>, vector<1x16x8xbf16>
    %113 = vector.shape_cast %112 : vector<1x16x8xbf16> to vector<16x8xbf16>
    %cst_65 = arith.constant dense<0.000000e+00> : vector<32x8xf32>
    %114 = tpu.matmul %111, %113, %cst_65 {dimension_numbers = #tpu.dot_dimension_numbers<[1], [0], [0], [1], [0, 0, 1, 1], [], []>} : vector<32x16xbf16>, vector<16x8xbf16>, vector<32x8xf32> -> vector<32x8xf32>
    %115 = arith.addf %110, %114 : vector<32x8xf32>
    %116 = vector.extract_strided_slice %94 {offsets = [4, 0], sizes = [32, 16], strides = [1, 1]} : vector<36x16xbf16> to vector<32x16xbf16>
    %c4_66 = arith.constant 4 : index
    %c0_67 = arith.constant 0 : index
    %c0_68 = arith.constant 0 : index
    %117 = vector.load %arg5[%c4_66, %c0_67, %c0_68] : memref<5x16x8xbf16, #tpu.memory_space<vmem>>, vector<1x16x8xbf16>
    %118 = vector.shape_cast %117 : vector<1x16x8xbf16> to vector<16x8xbf16>
    %cst_69 = arith.constant dense<0.000000e+00> : vector<32x8xf32>
    %119 = tpu.matmul %116, %118, %cst_69 {dimension_numbers = #tpu.dot_dimension_numbers<[1], [0], [0], [1], [0, 0, 1, 1], [], []>} : vector<32x16xbf16>, vector<16x8xbf16>, vector<32x8xf32> -> vector<32x8xf32>
    %120 = arith.addf %115, %119 : vector<32x8xf32>
    %c0_70 = arith.constant 0 : index
    %c0_71 = arith.constant 0 : index
    %121 = vector.load %arg8[%c0_70, %c0_71] : memref<1x8xf32, #tpu.memory_space<vmem>>, vector<1x8xf32>
    %122 = vector.broadcast %121 : vector<1x8xf32> to vector<32x8xf32>
    %123 = arith.addf %120, %122 : vector<32x8xf32>
    %c0_72 = arith.constant 0 : index
    %c0_73 = arith.constant 0 : index
    %c0_74 = arith.constant 0 : index
    %124 = vector.load %arg9[%c0_72, %c0_73, %c0_74] : memref<1x32x8xf32, #tpu.memory_space<vmem>>, vector<1x32x8xf32>
    %125 = vector.shape_cast %124 : vector<1x32x8xf32> to vector<32x8xf32>
    %126 = vector.shape_cast %123 : vector<32x8xf32> to vector<1x32x8xf32>
    tpu.vector_store %arg9[%c0_72, %c0_73, %c0_74], %126 {strides = array<i32>} : memref<1x32x8xf32, #tpu.memory_space<vmem>>, vector<1x32x8xf32>,
    return
  }
  func.func @transform_0(%arg0: i32, %arg1: i32) -> (i32, i32, i32) {
    %c0_i32 = arith.constant 0 : i32
    %c0_i32_0 = arith.constant 0 : i32
    %c0_i32_1 = arith.constant 0 : i32
    return %arg0, %c0_i32, %c0_i32_0 : i32, i32, i32
  }
  func.func @transform_1(%arg0: i32, %arg1: i32) -> (i32, i32, i32) {
    %c0_i32 = arith.constant 0 : i32
    %c0_i32_0 = arith.constant 0 : i32
    %c0_i32_1 = arith.constant 0 : i32
    %c0_i32_2 = arith.constant 0 : i32
    return %c0_i32, %c0_i32_0, %c0_i32_1 : i32, i32, i32
  }
  func.func @transform_2(%arg0: i32, %arg1: i32) -> (i32, i32, i32) {
    %c0_i32 = arith.constant 0 : i32
    %c0_i32_0 = arith.constant 0 : i32
    %c0_i32_1 = arith.constant 0 : i32
    %c0_i32_2 = arith.constant 0 : i32
    return %c0_i32, %c0_i32_0, %c0_i32_1 : i32, i32, i32
  }
  func.func @transform_3(%arg0: i32, %arg1: i32) -> (i32, i32, i32) {
    %c0_i32 = arith.constant 0 : i32
    %c0_i32_0 = arith.constant 0 : i32
    %c0_i32_1 = arith.constant 0 : i32
    %c0_i32_2 = arith.constant 0 : i32
    return %c0_i32, %c0_i32_0, %c0_i32_1 : i32, i32, i32
  }
  func.func @transform_4(%arg0: i32, %arg1: i32) -> (i32, i32) {
    %c0_i32 = arith.constant 0 : i32
    %c0_i32_0 = arith.constant 0 : i32
    %c0_i32_1 = arith.constant 0 : i32
    return %c0_i32, %c0_i32_0 : i32, i32
  }
  func.func @transform_5(%arg0: i32, %arg1: i32) -> (i32, i32) {
    %c0_i32 = arith.constant 0 : i32
    %c0_i32_0 = arith.constant 0 : i32
    %c0_i32_1 = arith.constant 0 : i32
    return %c0_i32, %c0_i32_0 : i32, i32
  }
  func.func @transform_6(%arg0: i32, %arg1: i32) -> (i32, i32) {
    %c0_i32 = arith.constant 0 : i32
    %c0_i32_0 = arith.constant 0 : i32
    %c0_i32_1 = arith.constant 0 : i32
    return %c0_i32, %c0_i32_0 : i32, i32
  }
  func.func @transform_7(%arg0: i32, %arg1: i32) -> (i32, i32, i32) {
    %c0_i32 = arith.constant 0 : i32
    %c0_i32_0 = arith.constant 0 : i32
    return %arg0, %arg1, %c0_i32 : i32, i32, i32
  }
}

</mosaic_0001>

<bundles_post_ra>
// kernel: tpu_custom_call.1
= control target key start
LH: loop header
LB: loop body
LE: loop exit
PB: predicated region body
PF: predicated region fallthrough
CT: control target
= control target key end

     0   :  { %s2220_s24 = smov 0   ;;  %s2222_s25 = smov 0   ;;  %s2492_s0 = inlined_call_operand.vmem [shape: bf16[2,44,8], index: 0, kind: input, shape index: {}]   ;;  %s2493_s1 = inlined_call_operand.vmem [shape: bf16[5,8,16], index: 1, kind: input, shape index: {}]   ;;  %s2494_s2 = inlined_call_operand.vmem [shape: bf16[5,16,16], index: 2, kind: input, shape index: {}]   ;;  %s2495_s3 = inlined_call_operand.vmem [shape: bf16[5,16,8], index: 3, kind: input, shape index: {}]   ;;  %s2496_s4 = inlined_call_operand.vmem [shape: f32[1,16], index: 4, kind: input, shape index: {}]   ;;  %s2497_s5 = inlined_call_operand.vmem [shape: f32[1,16], index: 5, kind: input, shape index: {}]   ;;  %s2498_s6 = inlined_call_operand.vmem [shape: f32[1,8], index: 6, kind: input, shape index: {}]   ;;  %s2499_s7 = inlined_call_operand.vmem [shape: f32[2,32,8], index: 7, kind: output, shape index: {}]  }
   0x1   :  { %s2224_s26 = smov 0  }
   0x2 LB: > { %s29_s27 = sadd.s32 1, %s2172_s25  ;;  %p1768_p0 = scmp.ge.s32.totalorder %s2176_s26, 1  ;;  %s2176_s26 = sphi %s2224_s26, %s17_s26   ;;  %s2172_s25 = sphi %s2222_s25, %s2501_s25   ;;  %s2168_s24 = sphi %s2220_s24, %s2500_s24  }
   0x3   : > { %p31_p1 = scmp.ge.s32.totalorder %s29_s27, 2  ;;  %p251_p2 = scmp.lt.s32.totalorder %s2176_s26, 3 }
   0x5   : > { %s2503_s27 = smov (%p31_p1, %s29_s27), 0  ;;  %p252_p3 = pnand %p1768_p0, %p251_p2 }
   0x6   : > { %v1772_v0 = vld [vmem:[%s2493_s1 + $0x4] sm:$0xf] (!%p252_p3)  ;;  %vm366_vm0 = vcmask (!%p252_p3), 1043456   ;;  %p287_p4 = scmp.lt.s32.totalorder (!%p252_p3), %s2168_s24, 1  ;;  %v2178_v1 = vmov (!%p252_p3), 0.0   ;;  %vm2179_vm1 = vmmov (!%p252_p3), 0  }
   0x7   : > { %255 = sbr.rel (%p252_p3) target bundleno = 885 (0x375), region = 48  ;;  %1907 = vmatprep.subr.bf16.mxu1 (!%p252_p3), %v2178_v1  ;;  %v368_v2 = vsel (!%p252_p3), %vm366_vm0, %v1772_v0, 0  ;;  %1909 = vmatprep.mubr.msk.bf16.mxu1 (!%p252_p3), %vm2179_vm1, %v2178_v1  ;;  %v1783_v3 = vld [vmem:[%s2493_s1 + $0x8] sm:$0xf] (!%p252_p3)  ;;  %v1791_v7 = vld [vmem:[%s2493_s1 + $0x10] sm:$0xf] (!%p252_p3) }
   0x8   : > { %1908 = vmatpush3.bf16.msra.mxu1 (!%p252_p3), %v368_v2  ;;  %1935 = vmatprep.subr.bf16.mxu0 (!%p252_p3), %v2178_v1  ;;  %v511_v4 = vsel (!%p252_p3), %vm366_vm0, %v1783_v3, 0  ;;  %vm495_vm2 = vcmask (!%p252_p3), 1046528   ;;  %v314_v18 = vld [vmem:[%s2493_s1] sm:$0xf] (!%p252_p3)  ;;  %vm332_vm3 = vsmask.f32 (!%p252_p3), 7424 }
   0x9   : > { %1921 = vmatprep.subr.bf16.mxu1 (!%p252_p3), %v2178_v1  ;;  %1937 = vmatprep.mubr.msk.bf16.mxu0 (!%p252_p3), %vm2179_vm1, %v2178_v1  ;;  %vm356_vm4 = vcmask (!%p252_p3), 64512   ;;  %v679_v19 = vsel (!%p252_p3), %vm366_vm0, %v1791_v7, 0  ;;  %v435_v24 = vsel (!%p252_p3), %vm366_vm0, %v314_v18, 0  ;;  %vm663_vm5 = vcmask (!%p252_p3), 1045504   ;;  %v1787_v35 = vld [vmem:[%s2493_s1 + $0xc] sm:$0xf] (!%p252_p3) }
   0xa   : > { %1936 = vmatpush3.bf16.msra.mxu0 (!%p252_p3), %v511_v4  ;;  %v598_v37 = vsel (!%p252_p3), %vm366_vm0, %v1787_v35, 0  ;;  %vm576_vm6 = vsmask.f32 (!%p252_p3), 6400  ;;  %v2125_v52 = vld [vmem:[%s2494_s2] sm:$0xff] (!%p252_p3)   ;;  %v2124_v53 = vld [vmem:[%s2494_s2 + $0x8] sm:$0xff] (!%p252_p3)   ;;  %vm839_vm8 = vcmask (!%p252_p3), 130048  }
   0xb   : > { %1963 = vmatprep.subr.bf16.mxu0 (!%p252_p3), %v2178_v1 }
   0xe   : > { %s2505_s24 = smov (!%p287_p4, %s2168_s24), 1 }
   0xf   : > { %s2093_s9 = smul.u32 24, %s2505_s24  ;;  %s1851_s28 = sshll.u32 %s2505_s24, 5 }
  0x10   : > { %s300_s10 = scalar_lea.vmem %s2499_s7, %s1851_s28 }
  0x11   : > { %s291_s12 = scalar_lea.vmem %s2492_s0, %s2093_s9 }
  0x12   : > { %v2260_v5 = vld [vmem:[%s291_s12] sm:$0xff]   ;;  %v2262_v6 = vld [vmem:[%s291_s12 + $0x8] sm:$0xff]   ;;  %v2267_v8 = vld [vmem:[%s291_s12 + $0x10] sm:$0xf] }
  0x13   : > { %v313_v9 = vld [vmem:[%s291_s12 + $0x14] sm:$0x3]  ;;  %v334_v10 = vshrl.u32 %v2260_v5, 16  ;;  %v336_v11 = vshll.u32 %v2260_v5, 16  ;;  %v341_v12 = vshll.u32 %v2262_v6, 16  ;;  %v496_v14 = vrot.slane %v2260_v5, 1 }
  0x14   : > { %v2273_v13 = vcombine.low %v2267_v8, %v313_v9  ;;  %v497_v15 = vrot.slane %v2262_v6, 1  ;;  %v345_v21 = vshrl.u32 %v2262_v6, 16  ;;  %v664_v33 = vrot.slane %v2260_v5, 2 }
  0x15   : > { %v338_v16 = vrot.slane %v336_v11, 1  ;;  %v343_v17 = vrot.slane %v341_v12, 1  ;;  %v665_v34 = vrot.slane %v2262_v6, 2  ;;  %v1779_v40 = vcombine.low %v2267_v8, %v2267_v8 }
  0x16   : > { %v349_v22 = vshll.u32 %v2273_v13, 16  ;;  %v498_v23 = vsel %vm495_vm2, %v496_v14, %v497_v15  ;;  %v499_v26 = vrot.slane %v2273_v13, 1  ;;  %v353_v31 = vshrl.u32 %v2273_v13, 16 }
  0x17   : > { %v339_v20 = vor.u32 %v338_v16, %v334_v10  ;;  %1938 = vmatmul.mubr.msk.bf16.vlgmr.msra.gmra.mrb[0].mxu0 %vm356_vm4, %v498_v23  ;;  %v347_v27 = vor.u32 %v345_v21, %v343_v17  ;;  %v666_v36 = vsel %vm663_vm5, %v664_v33, %v665_v34  ;;  %v667_v38 = vrot.slane %v2273_v13, 2 }
  0x18   : > { %1964 = vmatpush3.bf16.msra.mxu0 %v679_v19  ;;  %1941 = vmatprep.mubr.msk.bf16.mxu0 %vm2179_vm1, %v2178_v1  ;;  %v351_v28 = vrot.slane %v349_v22, 1  ;;  %v500_v29 = vsel %vm495_vm2, %v497_v15, %v499_v26  ;;  %v577_v41 = vrot.slane %v334_v10, 1  ;;  %v578_v42 = vrot.slane %v336_v11, 2 }
  0x19   : > { %v344_v25 = vsel %vm332_vm3, %v339_v20, %v343_v17  ;;  %1991 = vmatprep.subr.bf16.mxu0 %v2178_v1  ;;  %v668_v39 = vsel %vm663_vm5, %v665_v34, %v667_v38  ;;  %v581_v43 = vrot.slane %v341_v12, 2  ;;  %v580_v44 = vrot.slane %v345_v21, 1 }
  0x1a   : > { %1910 = vmatmul.mubr.msk.bf16.vlgmr.msra.gmra.mrb[0].mxu1 %vm356_vm4, %v344_v25  ;;  %v352_v30 = vsel %vm332_vm3, %v347_v27, %v351_v28  ;;  %v355_v32 = vor.u32 %v353_v31, %v351_v28  ;;  %v579_v45 = vor.u32 %v578_v42, %v577_v41  ;;  %v584_v48 = vrot.slane %v353_v31, 1 }
  0x1b   : > { %1922 = vmatpush3.bf16.msra.mxu1 %v435_v24  ;;  %1913 = vmatprep.mubr.msk.bf16.mxu1 %vm2179_vm1, %v2178_v1  ;;  %v582_v46 = vor.u32 %v581_v43, %v580_v44  ;;  %v585_v49 = vrot.slane %v349_v22, 2 }
  0x1c   : > { %1949 = vmatprep.subr.bf16.mxu1 %v2178_v1 }
  0x1d   : > { %v583_v47 = vsel %vm576_vm6, %v579_v45, %v582_v46  ;;  %v586_v50 = vor.u32 %v585_v49, %v584_v48 }
  0x1f   : > { %1942 = vmatmul.mubr.msk.bf16.gmra.mrb[4].mxu0 %vm356_vm4, %v500_v29  ;;  %v587_v51 = vsel %vm576_vm6, %v582_v46, %v586_v50 }
  0x20   : > { %1945 = vmatprep.mubr.msk.bf16.mxu0 %vm2179_vm1, %v2178_v1 }
  0x22   : > { %1914 = vmatmul.mubr.msk.bf16.gmra.mrb[4].mxu1 %vm356_vm4, %v352_v30 }
  0x23   : > { %1917 = vmatprep.mubr.msk.bf16.mxu1 %vm2179_vm1, %v2178_v1 }
  0x27   : > { %1946 = vmatmul.mubr.msk.bf16.gmra.mrb[8].mxu0 %vm356_vm4, %v499_v26 }
  0x28   : > { %1965 = vmatprep.mubr.msk.bf16.mxu0 %vm2179_vm1, %v2178_v1 }
  0x2a   : > { %1918 = vmatmul.mubr.msk.bf16.gmra.mrb[8].mxu1 %vm356_vm4, %v355_v32 }
  0x2b   : > { %1923 = vmatprep.mubr.msk.bf16.mxu1 %vm2179_vm1, %v2178_v1 }
  0x2f   : > { %1966 = vmatmul.mubr.msk.bf16.vlgmr.msra.gmra.mrb[12].mxu0 %vm356_vm4, %v666_v36 }
  0x30   : > { %1969 = vmatprep.mubr.msk.bf16.mxu0 %vm2179_vm1, %v2178_v1  ;;  %1992 = vmatpush3.bf16.msra.mxu0 %v2125_v52  ;;  %v1795_v52 = vld [vmem:[%s2496_s4] ss:$0 sm:$0xff] }
  0x31   : > { %2019 = vmatprep.subr.bf16.mxu0 %v2178_v1 }
  0x32   : > { %1924 = vmatmul.mubr.msk.bf16.vlgmr.msra.gmra.mrb[12].mxu1 %vm356_vm4, %v2260_v5 }
  0x33   : > { %1950 = vmatpush3.bf16.msra.mxu1 %v598_v37  ;;  %1927 = vmatprep.mubr.msk.bf16.mxu1 %vm2179_vm1, %v2178_v1 }
  0x34   : > { %1977 = vmatprep.subr.bf16.mxu1 %v2178_v1 }
  0x37   : > { %1970 = vmatmul.mubr.msk.bf16.gmra.mrb[16].mxu0 %vm356_vm4, %v668_v39 }
  0x38   : > { %1973 = vmatprep.mubr.msk.bf16.mxu0 %vm2179_vm1, %v2178_v1 }
  0x3a   : > { %1928 = vmatmul.mubr.msk.bf16.gmra.mrb[16].mxu1 %vm356_vm4, %v2262_v6 }
  0x3b   : > { %1931 = vmatprep.mubr.msk.bf16.mxu1 %vm2179_vm1, %v2178_v1 }
  0x3f   : > { %1974 = vmatmul.mubr.msk.bf16.gmra.mrb[20].mxu0 %vm356_vm4, %v667_v38 }
  0x40   : > { %1993 = vmatprep.mubr.msk.bf16.mxu0 %vm2179_vm1, %v2178_v1 }
  0x42   : > { %1932 = vmatmul.mubr.msk.bf16.gmra.mrb[20].mxu1 %vm356_vm4, %v1779_v40 }
  0x43   : > { %1951 = vmatprep.mubr.msk.bf16.mxu1 %vm2179_vm1, %v2178_v1 }
  0x4a   : > { %1952 = vmatmul.mubr.msk.bf16.vlgmr.msra.gmra.mrb[24].mxu1 %vm356_vm4, %v583_v47 }
  0x4b   : > { %1955 = vmatprep.mubr.msk.bf16.mxu1 %vm2179_vm1, %v2178_v1  ;;  %1978 = vmatpush3.bf16.msra.mxu1 %v2124_v53 }
  0x4c   : > { %2005 = vmatprep.subr.bf16.mxu1 %v2178_v1 }
  0x52   : > { %1956 = vmatmul.mubr.msk.bf16.gmra.mrb[28].mxu1 %vm356_vm4, %v587_v51 }
  0x53   : > { %1959 = vmatprep.mubr.msk.bf16.mxu1 %vm2179_vm1, %v2178_v1 }
  0x5a   : > { %1960 = vmatmul.mubr.msk.bf16.gmra.mrb[32].mxu1 %vm356_vm4, %v586_v50 }
  0x5b   : > { %1979 = vmatprep.mubr.msk.bf16.mxu1 %vm2179_vm1, %v2178_v1 }
  0xea   : > { %v547_v54 = vpop.f32.mrb[0].mxu0 }
  0xeb   : > { %v1939_v55 = vpop.f32.mrb[1].mxu0 }
  0xec   : > { %v550_v57 = vpop.f32.mrb[2].mxu0  ;;  %v760_v55 = vlaneseq }
  0xed   : > { %v404_v56 = vpop.f32.mrb[0].mxu1  ;;  %v1940_v59 = vpop.f32.mrb[3].mxu0 }
  0xee   : > { %v1911_v58 = vpop.f32.mrb[1].mxu1 }
  0xef   : > { %v407_v60 = vpop.f32.mrb[2].mxu1 }
  0xf0   : > { %v1912_v61 = vpop.f32.mrb[3].mxu1 }
  0xf2   : > { %v555_v62 = vpop.f32.mrb[4].mxu0 }
  0xf3   : > { %v1943_v63 = vpop.f32.mrb[5].mxu0 }
  0xf4   : > { %v558_v2 = vpop.f32.mrb[6].mxu0 }
  0xf5   : > { %v412_v0 = vpop.f32.mrb[4].mxu1  ;;  %v1944_v4 = vpop.f32.mrb[7].mxu0 }
  0xf6   : > { %v1915_v3 = vpop.f32.mrb[5].mxu1 }
  0xf7   : > { %v415_v5 = vpop.f32.mrb[6].mxu1 }
  0xf8   : > { %v1916_v6 = vpop.f32.mrb[7].mxu1 }
  0xfa   : > { %v563_v7 = vpop.f32.mrb[8].mxu0 }
  0xfb   : > { %v1947_v8 = vpop.f32.mrb[9].mxu0 }
  0xfc   : > { %v566_v10 = vpop.f32.mrb[10].mxu0 }
  0xfd   : > { %v420_v9 = vpop.f32.mrb[8].mxu1  ;;  %v1948_v12 = vpop.f32.mrb[11].mxu0 }
  0xfe   : > { %v1919_v11 = vpop.f32.mrb[9].mxu1 }
  0xff   : > { %v423_v13 = vpop.f32.mrb[10].mxu1 }
 0x100   : > { %v1920_v14 = vpop.f32.mrb[11].mxu1 }
 0x102   : > { %v715_v15 = vpop.f32.mrb[12].mxu0 }
 0x103   : > { %v1967_v16 = vpop.f32.mrb[13].mxu0 }
 0x104   : > { %v718_v18 = vpop.f32.mrb[14].mxu0 }
 0x105   : > { %v471_v17 = vpop.f32.mrb[12].mxu1  ;;  %v1968_v21 = vpop.f32.mrb[15].mxu0 }
 0x106   : > { %v472_v19 = vadd.f32 %v471_v17, %v404_v56  ;;  %v1925_v20 = vpop.f32.mrb[13].mxu1 }
 0x107   : > { %v474_v22 = vpop.f32.mrb[14].mxu1 }
 0x108   : > { %v475_v23 = vadd.f32 %v474_v22, %v407_v60  ;;  %v1926_v24 = vpop.f32.mrb[15].mxu1  ;;  %v569_v25 = vadd.f32 %v547_v54, %v472_v19  ;;  %v2364_v60 = vshrl.u32 %v760_v55, 7  ;;  %v2127_v19 = vld [vmem:[%s2494_s2 + $0x18] sm:$0xff]  }
 0x10a   : > { %v570_v26 = vadd.f32 %v550_v57, %v475_v23  ;;  %v723_v27 = vpop.f32.mrb[16].mxu0  ;;  %v767_v3 = vadd.s32 4294967292, %v2364_v60  ;;  %v2374_v23 = vadd.s32 32, %v2364_v60 }
 0x10b   : > { %v1971_v28 = vpop.f32.mrb[17].mxu0 }
 0x10c   : > { %v726_v30 = vpop.f32.mrb[18].mxu0  ;;  %vm772_vm7 = vcmp.ge.s32.totalorder %v767_v3, 0  ;;  %v771_v28 = vadd.s32 4294967292, %v2374_v23 }
 0x10d   : > { %v479_v29 = vpop.f32.mrb[16].mxu1  ;;  %v1972_v33 = vpop.f32.mrb[19].mxu0 }
 0x10e   : > { %v480_v31 = vadd.f32 %v479_v29, %v412_v0  ;;  %v1929_v32 = vpop.f32.mrb[17].mxu1  ;;  %vm781_vm9 = vcmp.lt.s32.totalorder %v771_v28, 32 }
 0x10f   : > { %v482_v34 = vpop.f32.mrb[18].mxu1 }
 0x110   : > { %v483_v35 = vadd.f32 %v482_v34, %v415_v5  ;;  %v1930_v36 = vpop.f32.mrb[19].mxu1  ;;  %v571_v37 = vadd.f32 %v555_v62, %v480_v31 }
 0x112   : > { %v572_v38 = vadd.f32 %v558_v2, %v483_v35  ;;  %v731_v39 = vpop.f32.mrb[20].mxu0 }
 0x113   : > { %v1975_v40 = vpop.f32.mrb[21].mxu0 }
 0x114   : > { %v734_v42 = vpop.f32.mrb[22].mxu0  ;;  %v2126_v40 = vld [vmem:[%s2494_s2 + $0x10] sm:$0xff]  }
 0x115   : > { %v487_v41 = vpop.f32.mrb[20].mxu1  ;;  %v1976_v45 = vpop.f32.mrb[23].mxu0 }
 0x116   : > { %v488_v43 = vadd.f32 %v487_v41, %v420_v9  ;;  %v1933_v44 = vpop.f32.mrb[21].mxu1 }
 0x117   : > { %v490_v46 = vpop.f32.mrb[22].mxu1 }
 0x118   : > { %v1934_v47 = vpop.f32.mrb[23].mxu1  ;;  %v573_v48 = vadd.f32 %v563_v7, %v488_v43 }
 0x11d   : > { %v634_v49 = vpop.f32.mrb[24].mxu1 }
 0x11e   : > { %v656_v50 = vadd.f32 %v634_v49, %v569_v25  ;;  %v1953_v51 = vpop.f32.mrb[25].mxu1 }
 0x11f   : > { %v637_v53 = vpop.f32.mrb[26].mxu1 }
 0x120   : > { %v737_v54 = vadd.f32 %v715_v15, %v656_v50  ;;  %v657_v56 = vadd.f32 %v637_v53, %v570_v26  ;;  %v1954_v57 = vpop.f32.mrb[27].mxu1 }
 0x122   : > { %v749_v58 = vadd.f32 %v1795_v52, %v737_v54  ;;  %v738_v59 = vadd.f32 %v718_v18, %v657_v56 }
 0x124   : > { %2134 = vtanh.f32 %v749_v58  ;;  %v750_v61 = vadd.f32 %v1795_v52, %v738_v59 }
 0x125   : > { %v642_v62 = vpop.f32.mrb[28].mxu1 }
 0x126   : > { %2136 = vtanh.f32 %v750_v61  ;;  %v658_v63 = vadd.f32 %v642_v62, %v571_v37  ;;  %v1957_v0 = vpop.f32.mrb[29].mxu1 }
 0x127   : > { %v645_v2 = vpop.f32.mrb[30].mxu1 }
 0x128   : > { %v739_v4 = vadd.f32 %v723_v27, %v658_v63  ;;  %v659_v5 = vadd.f32 %v645_v2, %v572_v38  ;;  %v1958_v6 = vpop.f32.mrb[31].mxu1 }
 0x129   : > { %v2436_v6 = vld [vmem:[%s2495_s3] sm:$0xff]  }
 0x12a   : > { %v751_v7 = vadd.f32 %v1795_v52, %v739_v4  ;;  %v740_v8 = vadd.f32 %v726_v30, %v659_v5  ;;  %v2128_v4 = vld [vmem:[%s2494_s2 + $0x20] sm:$0xff]   ;;  %v2129_v5 = vld [vmem:[%s2495_s3 + $0x8] sm:$0xff]  }
 0x12c   : > { %v752_v9 = vadd.f32 %v1795_v52, %v740_v8  ;;  %2138 = vtanh.f32 %v751_v7 }
 0x12d   : > { %v650_v10 = vpop.f32.mrb[32].mxu1 }
 0x12e   : > { %v2135_v11 = vpop.eup %2134  ;;  %2140 = vtanh.f32 %v752_v9  ;;  %v660_v12 = vadd.f32 %v650_v10, %v573_v48  ;;  %v1961_v13 = vpop.f32.mrb[33].mxu1 }
 0x12f   : > { %v797_v14 = vsel %vm772_vm7, %v2135_v11, 0.0  ;;  %v653_v15 = vpop.f32.mrb[34].mxu1 }
 0x130   : > { %v2137_v16 = vpop.eup %2136  ;;  %v741_v17 = vadd.f32 %v731_v39, %v660_v12  ;;  %v1962_v18 = vpop.f32.mrb[35].mxu1 }
 0x131   : > { %v802_v20 = vpack.c.bf16 %v2137_v16, %v797_v14 }
 0x132   : > { %v753_v21 = vadd.f32 %v1795_v52, %v741_v17 }
 0x133   : > { %1994 = vmatmul.mubr.msk.bf16.vlgmr.msra.gmra.mrb[24].mxu0 %vm839_vm8, %v802_v20  ;;  %v813_v22 = vshll.u32 %v802_v20, 16  ;;  %v811_v24 = vshrl.u32 %v802_v20, 16  ;;  %v979_v32 = vrot.slane %v802_v20, 1  ;;  %v1153_v38 = vrot.slane %v802_v20, 2 }
 0x134   : > { %2142 = vtanh.f32 %v753_v21  ;;  %1997 = vmatprep.mubr.msk.bf16.mxu0 %vm2179_vm1, %v2178_v1  ;;  %2020 = vmatpush3.bf16.msra.mxu0 %v2127_v19 }
 0x135   : > { %v815_v27 = vrot.slane %v813_v22, 1  ;;  %v1063_v30 = vrot.slane %v811_v24, 1  ;;  %v1064_v31 = vrot.slane %v813_v22, 2  ;;  %2047 = vmatprep.subr.bf16.mxu0 %v2129_v5 }
 0x136   : > { %v2139_v25 = vpop.eup %2138 }
 0x137   : > { %v816_v37 = vor.u32 %v815_v27, %v811_v24  ;;  %v1065_v48 = vor.u32 %v1064_v31, %v1063_v30 }
 0x138   : > { %v2141_v26 = vpop.eup %2140 }
 0x139   : > { %v803_v29 = vpack.c.bf16 %v2141_v26, %v2139_v25 }
 0x13b   : > { %1998 = vmatmul.mubr.msk.bf16.gmra.mrb[28].mxu0 %vm839_vm8, %v803_v29  ;;  %v818_v33 = vshll.u32 %v803_v29, 16  ;;  %v822_v34 = vshrl.u32 %v803_v29, 16  ;;  %v980_v35 = vrot.slane %v803_v29, 1  ;;  %v1154_v36 = vrot.slane %v803_v29, 2 }
 0x13c   : > { %2001 = vmatprep.mubr.msk.bf16.mxu0 %vm2179_vm1, %v2178_v1 }
 0x13d   : > { %v820_v39 = vrot.slane %v818_v33, 1  ;;  %v1066_v41 = vrot.slane %v822_v34, 1  ;;  %v1067_v42 = vrot.slane %v818_v33, 2  ;;  %v981_v43 = vsel %vm495_vm2, %v979_v32, %v980_v35 }
 0x13e   : > { %v2143_v44 = vpop.eup %2142  ;;  %v1155_v45 = vsel %vm663_vm5, %v1153_v38, %v1154_v36 }
 0x13f   : > { %v821_v46 = vsel %vm332_vm3, %v816_v37, %v820_v39  ;;  %v801_v47 = vsel %vm781_vm9, %v2143_v44, 0.0  ;;  %v1068_v49 = vor.u32 %v1067_v42, %v1066_v41  ;;  %v824_v56 = vor.u32 %v822_v34, %v820_v39 }
 0x140   : > { %1980 = vmatmul.mubr.msk.bf16.vlgmr.msra.gmra.mrb[36].mxu1 %vm839_vm8, %v821_v46  ;;  %v804_v50 = vpack.c.bf16 %v801_v47, %v801_v47 }
 0x141   : > { %2006 = vmatpush3.bf16.msra.mxu1 %v2126_v40  ;;  %1983 = vmatprep.mubr.msk.bf16.mxu1 %vm2179_vm1, %v2178_v1  ;;  %v1069_v51 = vsel %vm576_vm6, %v1065_v48, %v1068_v49 }
 0x142   : > { %v826_v52 = vshll.u32 %v804_v50, 16  ;;  %v830_v53 = vshrl.u32 %v804_v50, 16  ;;  %2033 = vmatprep.subr.bf16.mxu1 %v2178_v1  ;;  %v982_v54 = vrot.slane %v804_v50, 1  ;;  %v1156_v55 = vrot.slane %v804_v50, 2 }
 0x143   : > { %2002 = vmatmul.mubr.msk.bf16.gmra.mrb[32].mxu0 %vm839_vm8, %v804_v50 }
 0x144   : > { %v828_v57 = vrot.slane %v826_v52, 1  ;;  %2021 = vmatprep.mubr.msk.bf16.mxu0 %vm2179_vm1, %v2178_v1  ;;  %v1070_v58 = vrot.slane %v830_v53, 1  ;;  %v1071_v59 = vrot.slane %v826_v52, 2  ;;  %v983_v61 = vsel %vm495_vm2, %v980_v35, %v982_v54 }
 0x145   : > { %v1157_v62 = vsel %vm663_vm5, %v1154_v36, %v1156_v55 }
 0x146   : > { %v829_v63 = vsel %vm332_vm3, %v824_v56, %v828_v57  ;;  %v1072_v0 = vor.u32 %v1071_v59, %v1070_v58  ;;  %v832_v3 = vor.u32 %v830_v53, %v828_v57 }
 0x148   : > { %1984 = vmatmul.mubr.msk.bf16.gmra.mrb[40].mxu1 %vm839_vm8, %v829_v63  ;;  %v1073_v2 = vsel %vm576_vm6, %v1068_v49, %v1072_v0 }
 0x149   : > { %1987 = vmatprep.mubr.msk.bf16.mxu1 %vm2179_vm1, %v2178_v1 }
 0x14b   : > { %2022 = vmatmul.mubr.msk.bf16.vlgmr.msra.gmra.mrb[36].mxu0 %vm839_vm8, %v1069_v51 }
 0x14c   : > { %2025 = vmatprep.mubr.msk.bf16.mxu0 %vm2179_vm1, %v2178_v1  ;;  %2048 = vmatpush3.bf16.msra.mxu0 %v2129_v5 }
 0x14d   : > { %2053 = vmatprep.subr.bf16.mxu0 %v2436_v6 }
 0x150   : > { %1988 = vmatmul.mubr.msk.bf16.gmra.mrb[44].mxu1 %vm839_vm8, %v832_v3 }
 0x151   : > { %2007 = vmatprep.mubr.msk.bf16.mxu1 %vm2179_vm1, %v2178_v1 }
 0x153   : > { %2026 = vmatmul.mubr.msk.bf16.gmra.mrb[40].mxu0 %vm839_vm8, %v1073_v2 }
 0x154   : > { %2029 = vmatprep.mubr.msk.bf16.mxu0 %vm2179_vm1, %v2178_v1 }
 0x158   : > { %2008 = vmatmul.mubr.msk.bf16.vlgmr.msra.gmra.mrb[48].mxu1 %vm839_vm8, %v981_v43 }
 0x159   : > { %2034 = vmatpush3.bf16.msra.mxu1 %v2128_v4  ;;  %2011 = vmatprep.mubr.msk.bf16.mxu1 %vm2179_vm1, %v2178_v1 }
 0x15b   : > { %2030 = vmatmul.mubr.msk.bf16.gmra.mrb[44].mxu0 %vm839_vm8, %v1072_v0 }
 0x160   : > { %2012 = vmatmul.mubr.msk.bf16.gmra.mrb[52].mxu1 %vm839_vm8, %v983_v61 }
 0x161   : > { %2015 = vmatprep.mubr.msk.bf16.mxu1 %vm2179_vm1, %v2178_v1 }
 0x168   : > { %2016 = vmatmul.mubr.msk.bf16.gmra.mrb[56].mxu1 %vm839_vm8, %v982_v54 }
 0x169   : > { %2035 = vmatprep.mubr.msk.bf16.mxu1 %vm2179_vm1, %v2178_v1 }
 0x170   : > { %2036 = vmatmul.mubr.msk.bf16.vlgmr.msra.gmra.mrb[60].mxu1 %vm839_vm8, %v1155_v45 }
 0x171   : > { %2039 = vmatprep.mubr.msk.bf16.mxu1 %vm2179_vm1, %v2178_v1 }
 0x178   : > { %2040 = vmatmul.mubr.msk.bf16.gmra.mrb[64].mxu1 %vm839_vm8, %v1157_v62 }
 0x179   : > { %2043 = vmatprep.mubr.msk.bf16.mxu1 %vm2179_vm1, %v2178_v1 }
 0x180   : > { %2044 = vmatmul.mubr.msk.bf16.gmra.mrb[68].mxu1 %vm839_vm8, %v1156_v55 }
 0x206   : > { %v951_v7 = vpop.f32.mrb[24].mxu0 }
 0x207   : > { %v1995_v8 = vpop.f32.mrb[25].mxu0 }
 0x208   : > { %v954_v9 = vpop.f32.mrb[26].mxu0 }
 0x209   : > { %v1996_v10 = vpop.f32.mrb[27].mxu0 }
 0x20a   : > { %v1824_v10 = vld [vmem:[%s2497_s5] ss:$0 sm:$0xff] }
 0x20e   : > { %v959_v1 = vpop.f32.mrb[28].mxu0 }
 0x20f   : > { %v1999_v11 = vpop.f32.mrb[29].mxu0 }
 0x210   : > { %v962_v12 = vpop.f32.mrb[30].mxu0 }
 0x211   : > { %v2000_v13 = vpop.f32.mrb[31].mxu0 }
 0x213   : > { %v883_v14 = vpop.f32.mrb[36].mxu1 }
 0x214   : > { %v952_v15 = vadd.f32 %v951_v7, %v883_v14  ;;  %v1981_v16 = vpop.f32.mrb[37].mxu1 }
 0x215   : > { %v886_v17 = vpop.f32.mrb[38].mxu1 }
 0x216   : > { %v955_v18 = vadd.f32 %v954_v9, %v886_v17  ;;  %v1982_v19 = vpop.f32.mrb[39].mxu1  ;;  %v967_v20 = vpop.f32.mrb[32].mxu0 }
 0x217   : > { %v2003_v21 = vpop.f32.mrb[33].mxu0 }
 0x218   : > { %v970_v22 = vpop.f32.mrb[34].mxu0 }
 0x219   : > { %v2004_v24 = vpop.f32.mrb[35].mxu0 }
 0x21b   : > { %v891_v25 = vpop.f32.mrb[40].mxu1 }
 0x21c   : > { %v960_v26 = vadd.f32 %v959_v1, %v891_v25  ;;  %v1985_v27 = vpop.f32.mrb[41].mxu1 }
 0x21d   : > { %v894_v28 = vpop.f32.mrb[42].mxu1 }
 0x21e   : > { %v963_v29 = vadd.f32 %v962_v12, %v894_v28  ;;  %v1986_v30 = vpop.f32.mrb[43].mxu1  ;;  %v1123_v31 = vpop.f32.mrb[36].mxu0 }
 0x21f   : > { %v2023_v32 = vpop.f32.mrb[37].mxu0 }
 0x220   : > { %v1126_v33 = vpop.f32.mrb[38].mxu0 }
 0x221   : > { %v2024_v34 = vpop.f32.mrb[39].mxu0 }
 0x223   : > { %v899_v35 = vpop.f32.mrb[44].mxu1 }
 0x224   : > { %v968_v36 = vadd.f32 %v967_v20, %v899_v35  ;;  %v1989_v37 = vpop.f32.mrb[45].mxu1 }
 0x225   : > { %v902_v38 = vpop.f32.mrb[46].mxu1 }
 0x226   : > { %v1990_v39 = vpop.f32.mrb[47].mxu1  ;;  %v1131_v40 = vpop.f32.mrb[40].mxu0 }
 0x227   : > { %v2027_v41 = vpop.f32.mrb[41].mxu0 }
 0x228   : > { %v1134_v42 = vpop.f32.mrb[42].mxu0 }
 0x229   : > { %v2028_v43 = vpop.f32.mrb[43].mxu0 }
 0x22b   : > { %v1033_v44 = vpop.f32.mrb[48].mxu1 }
 0x22c   : > { %v1055_v45 = vadd.f32 %v1033_v44, %v952_v15  ;;  %v2009_v46 = vpop.f32.mrb[49].mxu1 }
 0x22d   : > { %v1036_v47 = vpop.f32.mrb[50].mxu1 }
 0x22e   : > { %v1056_v48 = vadd.f32 %v1036_v47, %v955_v18  ;;  %v2010_v49 = vpop.f32.mrb[51].mxu1  ;;  %v1139_v50 = vpop.f32.mrb[44].mxu0  ;;  %v1145_v51 = vadd.f32 %v1123_v31, %v1055_v45  ;;  %v1253_v18 = vadd.s32 4294967294, %v2364_v60 }
 0x22f   : > { %v2031_v52 = vpop.f32.mrb[45].mxu0 }
 0x230   : > { %v1142_v53 = vpop.f32.mrb[46].mxu0  ;;  %v1146_v54 = vadd.f32 %v1126_v33, %v1056_v48  ;;  %vm1258_vm10 = vcmp.ge.s32.totalorder %v1253_v18, 0 }
 0x231   : > { %v2032_v55 = vpop.f32.mrb[47].mxu0 }
 0x233   : > { %v1041_v56 = vpop.f32.mrb[52].mxu1 }
 0x234   : > { %v1057_v57 = vadd.f32 %v1041_v56, %v960_v26  ;;  %v2013_v58 = vpop.f32.mrb[53].mxu1 }
 0x235   : > { %v1044_v59 = vpop.f32.mrb[54].mxu1 }
 0x236   : > { %v1058_v61 = vadd.f32 %v1044_v59, %v963_v29  ;;  %v2014_v62 = vpop.f32.mrb[55].mxu1  ;;  %v1147_v63 = vadd.f32 %v1131_v40, %v1057_v57  ;;  %v1257_v40 = vadd.s32 4294967294, %v2374_v23 }
 0x238   : > { %v1148_v0 = vadd.f32 %v1134_v42, %v1058_v61  ;;  %vm1267_vm11 = vcmp.lt.s32.totalorder %v1257_v40, 32 }
 0x23b   : > { %v1049_v2 = vpop.f32.mrb[56].mxu1 }
 0x23c   : > { %v1059_v3 = vadd.f32 %v1049_v2, %v968_v36  ;;  %v2017_v4 = vpop.f32.mrb[57].mxu1 }
 0x23d   : > { %v1052_v5 = vpop.f32.mrb[58].mxu1 }
 0x23e   : > { %v2018_v7 = vpop.f32.mrb[59].mxu1  ;;  %v1149_v8 = vadd.f32 %v1139_v50, %v1059_v3 }
 0x243   : > { %v1207_v9 = vpop.f32.mrb[60].mxu1 }
 0x244   : > { %v1229_v1 = vadd.f32 %v1207_v9, %v1145_v51  ;;  %v2037_v11 = vpop.f32.mrb[61].mxu1 }
 0x245   : > { %v1210_v12 = vpop.f32.mrb[62].mxu1 }
 0x246   : > { %v1241_v13 = vadd.f32 %v1824_v10, %v1229_v1  ;;  %v1230_v14 = vadd.f32 %v1210_v12, %v1146_v54  ;;  %v2038_v15 = vpop.f32.mrb[63].mxu1  ;;  %v2131_v1 = vld [vmem:[%s2495_s3 + $0x10] sm:$0xff]  }
 0x247   : > { %v2132_v15 = vld [vmem:[%s2495_s3 + $0x18] sm:$0xff]  }
 0x248   : > { %2144 = vtanh.f32 %v1241_v13  ;;  %v1242_v16 = vadd.f32 %v1824_v10, %v1230_v14 }
 0x24a   : > { %2146 = vtanh.f32 %v1242_v16  ;;  %v1848_v16 = vld [vmem:[%s2498_s6] ss:$0 sm:$0xff] }
 0x24b   : > { %v1215_v17 = vpop.f32.mrb[64].mxu1 }
 0x24c   : > { %v1231_v19 = vadd.f32 %v1215_v17, %v1147_v63  ;;  %v2041_v20 = vpop.f32.mrb[65].mxu1 }
 0x24d   : > { %v1218_v21 = vpop.f32.mrb[66].mxu1 }
 0x24e   : > { %v1243_v22 = vadd.f32 %v1824_v10, %v1231_v19  ;;  %v1232_v24 = vadd.f32 %v1218_v21, %v1148_v0  ;;  %v2042_v25 = vpop.f32.mrb[67].mxu1 }
 0x250   : > { %v1244_v26 = vadd.f32 %v1824_v10, %v1232_v24  ;;  %2148 = vtanh.f32 %v1243_v22 }
 0x252   : > { %v2145_v27 = vpop.eup %2144  ;;  %2150 = vtanh.f32 %v1244_v26 }
 0x253   : > { %v1283_v28 = vsel %vm1258_vm10, %v2145_v27, 0.0  ;;  %v1223_v29 = vpop.f32.mrb[68].mxu1 }
 0x254   : > { %v2147_v30 = vpop.eup %2146  ;;  %v1233_v31 = vadd.f32 %v1223_v29, %v1149_v8  ;;  %v2045_v32 = vpop.f32.mrb[69].mxu1 }
 0x255   : > { %v1288_v33 = vpack.c.bf16 %v2147_v30, %v1283_v28  ;;  %v1226_v34 = vpop.f32.mrb[70].mxu1 }
 0x256   : > { %v1245_v35 = vadd.f32 %v1824_v10, %v1233_v31  ;;  %v2046_v60 = vpop.f32.mrb[71].mxu1 }
 0x257   : > { %v1299_v36 = vshll.u32 %v1288_v33, 16  ;;  %v1297_v37 = vshrl.u32 %v1288_v33, 16  ;;  %v1442_v43 = vrot.slane %v1288_v33, 1  ;;  %v1596_v51 = vrot.slane %v1288_v33, 2 }
 0x258   : > { %2152 = vtanh.f32 %v1245_v35 }
 0x259   : > { %v1301_v41 = vrot.slane %v1299_v36, 1  ;;  %v1515_v44 = vrot.slane %v1297_v37, 1  ;;  %v1516_v45 = vrot.slane %v1299_v36, 2 }
 0x25a   : > { %v2149_v38 = vpop.eup %2148 }
 0x25b   : > { %v1302_v50 = vor.u32 %v1301_v41, %v1297_v37  ;;  %v1517_v59 = vor.u32 %v1516_v45, %v1515_v44 }
 0x25c   : > { %v2151_v39 = vpop.eup %2150 }
 0x25d   : > { %v1289_v42 = vpack.c.bf16 %v2151_v39, %v2149_v38 }
 0x25f   : > { %v1304_v46 = vshll.u32 %v1289_v42, 16  ;;  %v1308_v47 = vshrl.u32 %v1289_v42, 16  ;;  %v1443_v48 = vrot.slane %v1289_v42, 1  ;;  %v1597_v49 = vrot.slane %v1289_v42, 2 }
 0x261   : > { %v1306_v52 = vrot.slane %v1304_v46, 1  ;;  %v1444_v53 = vsel %vm495_vm2, %v1442_v43, %v1443_v48  ;;  %v1518_v54 = vrot.slane %v1308_v47, 1  ;;  %v1519_v55 = vrot.slane %v1304_v46, 2 }
 0x262   : > { %v2153_v56 = vpop.eup %2152  ;;  %v1598_v23 = vsel %vm663_vm5, %v1596_v51, %v1597_v49 }
 0x263   : > { %v1287_v57 = vsel %vm1267_vm11, %v2153_v56, 0.0  ;;  %v1307_v58 = vsel %vm332_vm3, %v1302_v50, %v1306_v52  ;;  %v1520_v61 = vor.u32 %v1519_v55, %v1518_v54  ;;  %v1310_v5 = vor.u32 %v1308_v47, %v1306_v52 }
 0x264   : > { %v1290_v62 = vpack.c.bf16 %v1287_v57, %v1287_v57  ;;  %2049 = vmatprep.mubr.msk.bf16.mxu0 %vm839_vm8, %v1307_v58 }
 0x265   : > { %v1521_v63 = vsel %vm576_vm6, %v1517_v59, %v1520_v61 }
 0x266   : > { %v1312_v0 = vshll.u32 %v1290_v62, 16  ;;  %v1445_v2 = vrot.slane %v1290_v62, 1  ;;  %v1522_v3 = vshrl.u32 %v1290_v62, 16  ;;  %v1599_v4 = vrot.slane %v1290_v62, 2 }
 0x268   : > { %v1314_v7 = vrot.slane %v1312_v0, 1  ;;  %v1446_v8 = vsel %vm495_vm2, %v1443_v48, %v1445_v2  ;;  %v1524_v9 = vrot.slane %v1522_v3, 1  ;;  %v1525_v10 = vrot.slane %v1312_v0, 2 }
 0x269   : > { %v1600_v11 = vsel %vm663_vm5, %v1597_v49, %v1599_v4 }
 0x26a   : > { %v1315_v12 = vsel %vm332_vm3, %v1310_v5, %v1314_v7  ;;  %v1526_v13 = vor.u32 %v1525_v10, %v1524_v9 }
 0x26b   : > { %2050 = vmatmul.mubr.msk.bf16.vlgmr.msra.gmra.mrb[48].mxu0 %vm839_vm8, %v1315_v12 }
 0x26c   : > { %2054 = vmatpush3.bf16.msra.mxu0 %v2436_v6  ;;  %2055 = vmatprep.mubr.msk.bf16.mxu0 %vm839_vm8, %v1288_v33  ;;  %v1527_v14 = vsel %vm576_vm6, %v1520_v61, %v1526_v13  ;;  %v2133_v6 = vld [vmem:[%s2495_s3 + $0x20] sm:$0xff]  }
 0x26d   : > { %2059 = vmatprep.subr.bf16.mxu0 %v2131_v1 }
 0x277   : > { %2056 = vmatmul.mubr.msk.bf16.vlgmr.msra.gmra.mrb[48].mxu0 %vm839_vm8, %v1289_v42 }
 0x278   : > { %2060 = vmatpush3.bf16.msra.mxu0 %v2131_v1  ;;  %2061 = vmatprep.mubr.msk.bf16.mxu0 %vm839_vm8, %v1444_v53 }
 0x279   : > { %2065 = vmatprep.subr.bf16.mxu0 %v2132_v15 }
 0x283   : > { %2062 = vmatmul.mubr.msk.bf16.vlgmr.msra.gmra.mrb[48].mxu0 %vm839_vm8, %v1446_v8 }
 0x284   : > { %2066 = vmatpush3.bf16.msra.mxu0 %v2132_v15  ;;  %2067 = vmatprep.mubr.msk.bf16.mxu0 %vm839_vm8, %v1521_v63 }
 0x285   : > { %2071 = vmatprep.subr.bf16.mxu0 %v2133_v6 }
 0x28f   : > { %2068 = vmatmul.mubr.msk.bf16.vlgmr.msra.gmra.mrb[48].mxu0 %vm839_vm8, %v1527_v14 }
 0x290   : > { %2072 = vmatpush3.bf16.msra.mxu0 %v2133_v6  ;;  %2073 = vmatprep.mubr.msk.bf16.mxu0 %vm839_vm8, %v1598_v23 }
 0x29b   : > { %2074 = vmatmul.mubr.msk.bf16.vlgmr.msra.gmra.mrb[48].mxu0 %vm839_vm8, %v1600_v11 }
 0x36e   : > { %v2075_v17 = vpop.f32.mrb[48].mxu0 }
 0x36f   : > { %v1675_v18 = vadd.f32 %v2075_v17, %v1848_v16  ;;  %v1647_v19 = vpop.f32.mrb[49].mxu0 }
 0x370   : > { %v1673_v20 = vadd.f32 %v1848_v16, %v1647_v19  ;;  %v2076_v21 = vpop.f32.mrb[50].mxu0 }
 0x371   : > { %1679 = vst.msk [vmem:[%s300_s10 + $0x10] sm:$0xff] %vm356_vm4, %v1675_v18  ;;  %v1676_v22 = vadd.f32 %v2076_v21, %v1848_v16  ;;  %v1650_v24 = vpop.f32.mrb[51].mxu0 }
 0x372   : > { %1677 = vst.msk [vmem:[%s300_s10] sm:$0xff] %vm356_vm4, %v1673_v20  ;;  %v1674_v25 = vadd.f32 %v1848_v16, %v1650_v24 }
 0x373   : > { %1680 = vst.msk [vmem:[%s300_s10 + $0x18] sm:$0xff] %vm356_vm4, %v1676_v22 }
 0x374   : > { %1678 = vst.msk [vmem:[%s300_s10 + $0x8] sm:$0xff] %vm356_vm4, %v1674_v25 }
 0x375 PF: > { %s17_s26 = sadd.s32 1, %s2176_s26   ;;  %s2500_s24 = smov %s2172_s25 }
 0x376   : > { %p14_p5 = scmp.ge.s32.totalorder %s17_s26, 4   ;;  %s2501_s25 = smov %s2503_s27 }
 0x378   :  { %16 = sbr.rel (!%p14_p5) target bundleno = 2 (0x2), region = 91 }

</bundles_post_ra>
